<compile_context>
chip_gen: v6e
topology: v6e:2x2x1
jax: 0.10.0
libtpu: 0.0.40
codegen_flags: <defaults>
</compile_context>

<pallas_src>
import functools

import jax
import jax.numpy as jnp
from jax.experimental import pallas as pl
from jax.experimental.pallas import tpu as pltpu

N_EMBD = 64
BLOCK_SIZE = 32
NUM_HEADS = 4
HEAD_SIZE = N_EMBD // NUM_HEADS  # 16


def _mha_kernel(x_ref, wqkv_ref, wp_ref, bp_ref, o_ref, *, num_heads):
    # x_ref    : (1, T, C)  VMEM f32   (one batch element per grid step)
    # wqkv_ref : (C, 3*C)   VMEM bf16  packed [q | k | v], per-head width hs;
    #                                  1/sqrt(C) scale pre-folded into Q cols
    # wp_ref   : (C, C)     VMEM bf16  output projection (pre-transposed: y @ wp)
    # bp_ref   : (1, C)     VMEM f32
    # o_ref    : (1, T, C)  VMEM
    x = x_ref[0]                       # (T, C) f32
    t, c = x.shape
    hs = c // num_heads

    # Fused QKV projection for ALL heads: one (T, C) x (C, 3C) matmul
    # (bf16 operands, f32 accumulation on the MXU).
    qkv = jnp.dot(x.astype(jnp.bfloat16), wqkv_ref[...],
                  preferred_element_type=jnp.float32)        # (T, 3C) f32

    # Causal mask as an additive finite bias (no -inf select), per batch block.
    row = jax.lax.broadcasted_iota(jnp.int32, (t, t), 0)
    col = jax.lax.broadcasted_iota(jnp.int32, (t, t), 1)
    bias = jnp.where(col <= row, jnp.float32(0.0), jnp.float32(-1e30))

    # f32 accumulator for the output projection, held in registers.
    acc = jnp.zeros((t, c), dtype=jnp.float32)

    for h in range(num_heads):         # static unroll, H is small
        q = qkv[:, h * hs:(h + 1) * hs]                      # (T, hs) scaled
        k = qkv[:, c + h * hs:c + (h + 1) * hs]              # (T, hs)
        v = qkv[:, 2 * c + h * hs:2 * c + (h + 1) * hs]      # (T, hs)

        # q @ k^T via dot_general contracting dim 1 with dim 1 (no explicit .T)
        s = jax.lax.dot_general(
            q.astype(jnp.bfloat16), k.astype(jnp.bfloat16),
            (((1,), (1,)), ((), ())),
            preferred_element_type=jnp.float32)              # (T, T)
        s = s + bias                   # score scale already folded into wq

        # numerically stable softmax in f32; EUP reciprocal for normalization
        mx = jnp.max(s, axis=-1, keepdims=True)
        p = jnp.exp(s - mx)
        denom = jnp.sum(p, axis=-1, keepdims=True)
        p = p * pl.reciprocal(denom, approx=True)

        pv = jnp.dot(p.astype(jnp.bfloat16), v.astype(jnp.bfloat16),
                     preferred_element_type=jnp.float32)     # (T, hs)

        # Accumulate this head's contribution to the output projection
        # directly (static, sublane-aligned row slice of wp) -- no cat scratch.
        acc = acc + jnp.dot(pv.astype(jnp.bfloat16),
                            wp_ref[h * hs:(h + 1) * hs, :],
                            preferred_element_type=jnp.float32)

    out = acc + bp_ref[...]
    o_ref[0] = out.astype(o_ref.dtype)


def multi_head_attention(x, wqkv, wp_t, bp, *, num_heads=NUM_HEADS):
    """x: (B, T, C) f32; wqkv: (C, 3C) bf16 packed (Q pre-scaled);
    wp_t: (C, C) bf16; bp: (1, C) f32."""
    B, T, C = x.shape
    hs = C // num_heads

    flops = B * (2 * T * C * 3 * C                      # fused QKV projection
                 + num_heads * 2 * (2 * T * T * hs)     # scores + PV per head
                 + 2 * T * C * C)                       # output projection
    transcendentals = B * num_heads * T * T             # softmax exp
    bytes_accessed = (4 * B * T * C                      # x
                      + 2 * (C * 3 * C + C * C)          # bf16 weights
                      + 4 * C                            # bias
                      + 4 * B * T * C)                   # output

    out = pl.pallas_call(
        functools.partial(_mha_kernel, num_heads=num_heads),
        out_shape=jax.ShapeDtypeStruct((B, T, C), x.dtype),
        grid_spec=pltpu.PrefetchScalarGridSpec(
            num_scalar_prefetch=0,
            grid=(B,),                                   # parallel over batch
            in_specs=[
                pl.BlockSpec((1, T, C), lambda b: (b, 0, 0)),
                pl.BlockSpec((C, 3 * C), lambda b: (0, 0)),
                pl.BlockSpec((C, C), lambda b: (0, 0)),
                pl.BlockSpec((1, C), lambda b: (0, 0)),
            ],
            out_specs=pl.BlockSpec((1, T, C), lambda b: (b, 0, 0)),
        ),
        compiler_params=pltpu.CompilerParams(
            dimension_semantics=("parallel",)),
        cost_estimate=pl.CostEstimate(
            flops=flops,
            transcendentals=transcendentals,
            bytes_accessed=bytes_accessed),
    )(x, wqkv, wp_t, bp)
    return out


def _pack_qkv(wq, wk, wv, *, scale):
    """(H, C, hs) per-head weights -> packed (C, 3C): [q_heads | k_heads | v_heads].

    The score scale (1/sqrt(n_embd)) is folded into the Q columns so the
    kernel never multiplies the (T, T) score tile by a scalar.
    """
    H, C, hs = wq.shape

    def pack(w):
        return jnp.transpose(w, (1, 0, 2)).reshape(C, H * hs)

    return jnp.concatenate([pack(wq) * scale, pack(wk), pack(wv)], axis=1)


def _reference(x, wq, wk, wv, wp_t, bp):
    """Pure-JAX reference mirroring the PyTorch forward (f32)."""
    B, T, C = x.shape
    scale = C ** -0.5                   # PyTorch uses C ** (-0.5), C == n_embd
    mask = jnp.tril(jnp.ones((T, T), dtype=bool))
    outs = []
    for h in range(wq.shape[0]):
        q = x @ wq[h]
        k = x @ wk[h]
        v = x @ wv[h]
        wei = jnp.einsum("btd,bsd->bts", q, k) * scale
        wei = jnp.where(mask[None], wei, -jnp.inf)
        wei = jax.nn.softmax(wei, axis=-1)
        outs.append(jnp.einsum("bts,bsd->btd", wei, v))
    cat = jnp.concatenate(outs, axis=-1)
    return cat @ wp_t + bp[None]


if __name__ == "__main__":
    key = jax.random.PRNGKey(0)
    kx, kq, kk, kv, kp, kb = jax.random.split(key, 6)

    B, T, C = 2, BLOCK_SIZE, N_EMBD
    H, hs = NUM_HEADS, HEAD_SIZE

    x = jax.random.normal(kx, (B, T, C), dtype=jnp.float32)

    # Deterministic synthetic parameters (shapes follow nn.Linear in the module).
    wq = 0.02 * jax.random.normal(kq, (H, C, hs), dtype=jnp.float32)
    wk = 0.02 * jax.random.normal(kk, (H, C, hs), dtype=jnp.float32)
    wv = 0.02 * jax.random.normal(kv, (H, C, hs), dtype=jnp.float32)
    wp_t = 0.02 * jax.random.normal(kp, (C, C), dtype=jnp.float32)
    bp = 0.01 * jax.random.normal(kb, (1, C), dtype=jnp.float32)

    # Pack once (scale folded into Q), then cast weights to bf16 once.
    wqkv = _pack_qkv(wq, wk, wv, scale=C ** -0.5).astype(jnp.bfloat16)
    wp_bf16 = wp_t.astype(jnp.bfloat16)

    out = multi_head_attention(x, wqkv, wp_bf16, bp, num_heads=H)
    out = jax.block_until_ready(out)

    ref = _reference(x, wq, wk, wv, wp_t, bp)
    assert out.shape == (B, T, C)
    # Tolerance accounts for bf16 MXU operands / bf16 weights (f32 accumulation)
    # and the approx EUP reciprocal in the softmax; f32 elementwise otherwise.
    assert jnp.allclose(out, ref, atol=3e-3, rtol=3e-2), "mismatch vs reference"

    print("KERNEL_OK")
</pallas_src>

<mosaic_0001>
module attributes {stable_mosaic.version = 11 : i64} {
  func.func @_mha_kernel(%arg0: i32, %arg1: memref<1x32x64xf32, #tpu.memory_space<vmem>>, %arg2: memref<64x192xbf16, #tpu.memory_space<vmem>>, %arg3: memref<64x64xbf16, #tpu.memory_space<vmem>>, %arg4: memref<1x64xf32, #tpu.memory_space<vmem>>, %arg5: memref<1x32x64xf32, #tpu.memory_space<vmem>>) attributes {dimension_semantics = [#tpu.dimension_semantics<parallel>], iteration_bounds = array<i64: 2>, scalar_prefetch = 0 : i64, scratch_operands = 0 : i64, tpu.core_type = #tpu.core_type<tc>, window_params = [{transform_indices = @transform_0, window_bounds = array<i64: 1, 32, 64>}, {pipeline_mode = #tpu.pipeline_mode<synchronous>, transform_indices = @transform_1, window_bounds = array<i64: 64, 192>}, {pipeline_mode = #tpu.pipeline_mode<synchronous>, transform_indices = @transform_2, window_bounds = array<i64: 64, 64>}, {pipeline_mode = #tpu.pipeline_mode<synchronous>, transform_indices = @transform_3, window_bounds = array<i64: 1, 64>}, {transform_indices = @transform_4, window_bounds = array<i64: 1, 32, 64>}]} {
    %c0 = arith.constant 0 : index
    %c0_0 = arith.constant 0 : index
    %c0_1 = arith.constant 0 : index
    %0 = vector.load %arg1[%c0, %c0_0, %c0_1] : memref<1x32x64xf32, #tpu.memory_space<vmem>>, vector<1x32x64xf32>
    %1 = vector.shape_cast %0 : vector<1x32x64xf32> to vector<32x64xf32>
    %2 = arith.truncf %1 : vector<32x64xf32> to vector<32x64xbf16>
    %c0_2 = arith.constant 0 : index
    %c0_3 = arith.constant 0 : index
    %3 = vector.load %arg2[%c0_2, %c0_3] : memref<64x192xbf16, #tpu.memory_space<vmem>>, vector<64x192xbf16>
    %cst = arith.constant dense<0.000000e+00> : vector<32x192xf32>
    %4 = tpu.matmul %2, %3, %cst {dimension_numbers = #tpu.dot_dimension_numbers<[1], [0], [0], [1], [0, 0, 1, 1], [], []>} : vector<32x64xbf16>, vector<64x192xbf16>, vector<32x192xf32> -> vector<32x192xf32>
    %5 = tpu.iota {dimensions = array<i32: 0>} : vector<32x32xi32>
    %6 = tpu.iota {dimensions = array<i32: 1>} : vector<32x32xi32>
    %7 = arith.cmpi sle, %6, %5 : vector<32x32xi32>
    %cst_4 = arith.constant 0.000000e+00 : f32
    %cst_5 = arith.constant -1.000000e+30 : f32
    %8 = vector.broadcast %cst_4 : f32 to vector<32x32xf32>
    %9 = vector.broadcast %cst_5 : f32 to vector<32x32xf32>
    %10 = arith.select %7, %8, %9 : vector<32x32xi1>, vector<32x32xf32>
    %cst_6 = arith.constant 0.000000e+00 : f32
    %11 = vector.broadcast %cst_6 : f32 to vector<32x64xf32>
    %12 = vector.extract_strided_slice %4 {offsets = [0, 0], sizes = [32, 16], strides = [1, 1]} : vector<32x192xf32> to vector<32x16xf32>
    %13 = vector.extract_strided_slice %4 {offsets = [0, 64], sizes = [32, 16], strides = [1, 1]} : vector<32x192xf32> to vector<32x16xf32>
    %14 = vector.extract_strided_slice %4 {offsets = [0, 128], sizes = [32, 16], strides = [1, 1]} : vector<32x192xf32> to vector<32x16xf32>
    %15 = arith.truncf %12 : vector<32x16xf32> to vector<32x16xbf16>
    %16 = arith.truncf %13 : vector<32x16xf32> to vector<32x16xbf16>
    %cst_7 = arith.constant dense<0.000000e+00> : vector<32x32xf32>
    %17 = tpu.matmul %15, %16, %cst_7 {dimension_numbers = #tpu.dot_dimension_numbers<[1], [1], [0], [0], [0, 0, 1, 0], [], []>} : vector<32x16xbf16>, vector<32x16xbf16>, vector<32x32xf32> -> vector<32x32xf32>
    %18 = arith.addf %17, %10 : vector<32x32xf32>
    %cst_8 = arith.constant dense<0xFF800000> : vector<32xf32>
    %19 = vector.multi_reduction <maximumf>, %18, %cst_8 [1] : vector<32x32xf32> to vector<32xf32>
    %20 = vector.shape_cast %19 : vector<32xf32> to vector<32x1xf32>
    %21 = vector.broadcast %20 : vector<32x1xf32> to vector<32x32xf32>
    %22 = arith.subf %18, %21 : vector<32x32xf32>
    %23 = math.exp %22 : vector<32x32xf32>
    %cst_9 = arith.constant dense<0.000000e+00> : vector<32xf32>
    %24 = vector.multi_reduction <add>, %23, %cst_9 [1] : vector<32x32xf32> to vector<32xf32>
    %25 = vector.shape_cast %24 : vector<32xf32> to vector<32x1xf32>
    %26 = tpu.reciprocal %25 {approx = true} : vector<32x1xf32> -> vector<32x1xf32>
    %27 = vector.broadcast %26 : vector<32x1xf32> to vector<32x32xf32>
    %28 = arith.mulf %23, %27 : vector<32x32xf32>
    %29 = arith.truncf %28 : vector<32x32xf32> to vector<32x32xbf16>
    %30 = arith.truncf %14 : vector<32x16xf32> to vector<32x16xbf16>
    %cst_10 = arith.constant dense<0.000000e+00> : vector<32x16xf32>
    %31 = tpu.matmul %29, %30, %cst_10 {dimension_numbers = #tpu.dot_dimension_numbers<[1], [0], [0], [1], [0, 0, 1, 1], [], []>} : vector<32x32xbf16>, vector<32x16xbf16>, vector<32x16xf32> -> vector<32x16xf32>
    %32 = arith.truncf %31 : vector<32x16xf32> to vector<32x16xbf16>
    %c0_11 = arith.constant 0 : index
    %c0_12 = arith.constant 0 : index
    %33 = vector.load %arg3[%c0_11, %c0_12] : memref<64x64xbf16, #tpu.memory_space<vmem>>, vector<16x64xbf16>
    %cst_13 = arith.constant dense<0.000000e+00> : vector<32x64xf32>
    %34 = tpu.matmul %32, %33, %cst_13 {dimension_numbers = #tpu.dot_dimension_numbers<[1], [0], [0], [1], [0, 0, 1, 1], [], []>} : vector<32x16xbf16>, vector<16x64xbf16>, vector<32x64xf32> -> vector<32x64xf32>
    %35 = arith.addf %11, %34 : vector<32x64xf32>
    %36 = vector.extract_strided_slice %4 {offsets = [0, 16], sizes = [32, 16], strides = [1, 1]} : vector<32x192xf32> to vector<32x16xf32>
    %37 = vector.extract_strided_slice %4 {offsets = [0, 80], sizes = [32, 16], strides = [1, 1]} : vector<32x192xf32> to vector<32x16xf32>
    %38 = vector.extract_strided_slice %4 {offsets = [0, 144], sizes = [32, 16], strides = [1, 1]} : vector<32x192xf32> to vector<32x16xf32>
    %39 = arith.truncf %36 : vector<32x16xf32> to vector<32x16xbf16>
    %40 = arith.truncf %37 : vector<32x16xf32> to vector<32x16xbf16>
    %cst_14 = arith.constant dense<0.000000e+00> : vector<32x32xf32>
    %41 = tpu.matmul %39, %40, %cst_14 {dimension_numbers = #tpu.dot_dimension_numbers<[1], [1], [0], [0], [0, 0, 1, 0], [], []>} : vector<32x16xbf16>, vector<32x16xbf16>, vector<32x32xf32> -> vector<32x32xf32>
    %42 = arith.addf %41, %10 : vector<32x32xf32>
    %cst_15 = arith.constant dense<0xFF800000> : vector<32xf32>
    %43 = vector.multi_reduction <maximumf>, %42, %cst_15 [1] : vector<32x32xf32> to vector<32xf32>
    %44 = vector.shape_cast %43 : vector<32xf32> to vector<32x1xf32>
    %45 = vector.broadcast %44 : vector<32x1xf32> to vector<32x32xf32>
    %46 = arith.subf %42, %45 : vector<32x32xf32>
    %47 = math.exp %46 : vector<32x32xf32>
    %cst_16 = arith.constant dense<0.000000e+00> : vector<32xf32>
    %48 = vector.multi_reduction <add>, %47, %cst_16 [1] : vector<32x32xf32> to vector<32xf32>
    %49 = vector.shape_cast %48 : vector<32xf32> to vector<32x1xf32>
    %50 = tpu.reciprocal %49 {approx = true} : vector<32x1xf32> -> vector<32x1xf32>
    %51 = vector.broadcast %50 : vector<32x1xf32> to vector<32x32xf32>
    %52 = arith.mulf %47, %51 : vector<32x32xf32>
    %53 = arith.truncf %52 : vector<32x32xf32> to vector<32x32xbf16>
    %54 = arith.truncf %38 : vector<32x16xf32> to vector<32x16xbf16>
    %cst_17 = arith.constant dense<0.000000e+00> : vector<32x16xf32>
    %55 = tpu.matmul %53, %54, %cst_17 {dimension_numbers = #tpu.dot_dimension_numbers<[1], [0], [0], [1], [0, 0, 1, 1], [], []>} : vector<32x32xbf16>, vector<32x16xbf16>, vector<32x16xf32> -> vector<32x16xf32>
    %56 = arith.truncf %55 : vector<32x16xf32> to vector<32x16xbf16>
    %c16 = arith.constant 16 : index
    %c0_18 = arith.constant 0 : index
    %57 = vector.load %arg3[%c16, %c0_18] : memref<64x64xbf16, #tpu.memory_space<vmem>>, vector<16x64xbf16>
    %cst_19 = arith.constant dense<0.000000e+00> : vector<32x64xf32>
    %58 = tpu.matmul %56, %57, %cst_19 {dimension_numbers = #tpu.dot_dimension_numbers<[1], [0], [0], [1], [0, 0, 1, 1], [], []>} : vector<32x16xbf16>, vector<16x64xbf16>, vector<32x64xf32> -> vector<32x64xf32>
    %59 = arith.addf %35, %58 : vector<32x64xf32>
    %60 = vector.extract_strided_slice %4 {offsets = [0, 32], sizes = [32, 16], strides = [1, 1]} : vector<32x192xf32> to vector<32x16xf32>
    %61 = vector.extract_strided_slice %4 {offsets = [0, 96], sizes = [32, 16], strides = [1, 1]} : vector<32x192xf32> to vector<32x16xf32>
    %62 = vector.extract_strided_slice %4 {offsets = [0, 160], sizes = [32, 16], strides = [1, 1]} : vector<32x192xf32> to vector<32x16xf32>
    %63 = arith.truncf %60 : vector<32x16xf32> to vector<32x16xbf16>
    %64 = arith.truncf %61 : vector<32x16xf32> to vector<32x16xbf16>
    %cst_20 = arith.constant dense<0.000000e+00> : vector<32x32xf32>
    %65 = tpu.matmul %63, %64, %cst_20 {dimension_numbers = #tpu.dot_dimension_numbers<[1], [1], [0], [0], [0, 0, 1, 0], [], []>} : vector<32x16xbf16>, vector<32x16xbf16>, vector<32x32xf32> -> vector<32x32xf32>
    %66 = arith.addf %65, %10 : vector<32x32xf32>
    %cst_21 = arith.constant dense<0xFF800000> : vector<32xf32>
    %67 = vector.multi_reduction <maximumf>, %66, %cst_21 [1] : vector<32x32xf32> to vector<32xf32>
    %68 = vector.shape_cast %67 : vector<32xf32> to vector<32x1xf32>
    %69 = vector.broadcast %68 : vector<32x1xf32> to vector<32x32xf32>
    %70 = arith.subf %66, %69 : vector<32x32xf32>
    %71 = math.exp %70 : vector<32x32xf32>
    %cst_22 = arith.constant dense<0.000000e+00> : vector<32xf32>
    %72 = vector.multi_reduction <add>, %71, %cst_22 [1] : vector<32x32xf32> to vector<32xf32>
    %73 = vector.shape_cast %72 : vector<32xf32> to vector<32x1xf32>
    %74 = tpu.reciprocal %73 {approx = true} : vector<32x1xf32> -> vector<32x1xf32>
    %75 = vector.broadcast %74 : vector<32x1xf32> to vector<32x32xf32>
    %76 = arith.mulf %71, %75 : vector<32x32xf32>
    %77 = arith.truncf %76 : vector<32x32xf32> to vector<32x32xbf16>
    %78 = arith.truncf %62 : vector<32x16xf32> to vector<32x16xbf16>
    %cst_23 = arith.constant dense<0.000000e+00> : vector<32x16xf32>
    %79 = tpu.matmul %77, %78, %cst_23 {dimension_numbers = #tpu.dot_dimension_numbers<[1], [0], [0], [1], [0, 0, 1, 1], [], []>} : vector<32x32xbf16>, vector<32x16xbf16>, vector<32x16xf32> -> vector<32x16xf32>
    %80 = arith.truncf %79 : vector<32x16xf32> to vector<32x16xbf16>
    %c32 = arith.constant 32 : index
    %c0_24 = arith.constant 0 : index
    %81 = vector.load %arg3[%c32, %c0_24] : memref<64x64xbf16, #tpu.memory_space<vmem>>, vector<16x64xbf16>
    %cst_25 = arith.constant dense<0.000000e+00> : vector<32x64xf32>
    %82 = tpu.matmul %80, %81, %cst_25 {dimension_numbers = #tpu.dot_dimension_numbers<[1], [0], [0], [1], [0, 0, 1, 1], [], []>} : vector<32x16xbf16>, vector<16x64xbf16>, vector<32x64xf32> -> vector<32x64xf32>
    %83 = arith.addf %59, %82 : vector<32x64xf32>
    %84 = vector.extract_strided_slice %4 {offsets = [0, 48], sizes = [32, 16], strides = [1, 1]} : vector<32x192xf32> to vector<32x16xf32>
    %85 = vector.extract_strided_slice %4 {offsets = [0, 112], sizes = [32, 16], strides = [1, 1]} : vector<32x192xf32> to vector<32x16xf32>
    %86 = vector.extract_strided_slice %4 {offsets = [0, 176], sizes = [32, 16], strides = [1, 1]} : vector<32x192xf32> to vector<32x16xf32>
    %87 = arith.truncf %84 : vector<32x16xf32> to vector<32x16xbf16>
    %88 = arith.truncf %85 : vector<32x16xf32> to vector<32x16xbf16>
    %cst_26 = arith.constant dense<0.000000e+00> : vector<32x32xf32>
    %89 = tpu.matmul %87, %88, %cst_26 {dimension_numbers = #tpu.dot_dimension_numbers<[1], [1], [0], [0], [0, 0, 1, 0], [], []>} : vector<32x16xbf16>, vector<32x16xbf16>, vector<32x32xf32> -> vector<32x32xf32>
    %90 = arith.addf %89, %10 : vector<32x32xf32>
    %cst_27 = arith.constant dense<0xFF800000> : vector<32xf32>
    %91 = vector.multi_reduction <maximumf>, %90, %cst_27 [1] : vector<32x32xf32> to vector<32xf32>
    %92 = vector.shape_cast %91 : vector<32xf32> to vector<32x1xf32>
    %93 = vector.broadcast %92 : vector<32x1xf32> to vector<32x32xf32>
    %94 = arith.subf %90, %93 : vector<32x32xf32>
    %95 = math.exp %94 : vector<32x32xf32>
    %cst_28 = arith.constant dense<0.000000e+00> : vector<32xf32>
    %96 = vector.multi_reduction <add>, %95, %cst_28 [1] : vector<32x32xf32> to vector<32xf32>
    %97 = vector.shape_cast %96 : vector<32xf32> to vector<32x1xf32>
    %98 = tpu.reciprocal %97 {approx = true} : vector<32x1xf32> -> vector<32x1xf32>
    %99 = vector.broadcast %98 : vector<32x1xf32> to vector<32x32xf32>
    %100 = arith.mulf %95, %99 : vector<32x32xf32>
    %101 = arith.truncf %100 : vector<32x32xf32> to vector<32x32xbf16>
    %102 = arith.truncf %86 : vector<32x16xf32> to vector<32x16xbf16>
    %cst_29 = arith.constant dense<0.000000e+00> : vector<32x16xf32>
    %103 = tpu.matmul %101, %102, %cst_29 {dimension_numbers = #tpu.dot_dimension_numbers<[1], [0], [0], [1], [0, 0, 1, 1], [], []>} : vector<32x32xbf16>, vector<32x16xbf16>, vector<32x16xf32> -> vector<32x16xf32>
    %104 = arith.truncf %103 : vector<32x16xf32> to vector<32x16xbf16>
    %c48 = arith.constant 48 : index
    %c0_30 = arith.constant 0 : index
    %105 = vector.load %arg3[%c48, %c0_30] : memref<64x64xbf16, #tpu.memory_space<vmem>>, vector<16x64xbf16>
    %cst_31 = arith.constant dense<0.000000e+00> : vector<32x64xf32>
    %106 = tpu.matmul %104, %105, %cst_31 {dimension_numbers = #tpu.dot_dimension_numbers<[1], [0], [0], [1], [0, 0, 1, 1], [], []>} : vector<32x16xbf16>, vector<16x64xbf16>, vector<32x64xf32> -> vector<32x64xf32>
    %107 = arith.addf %83, %106 : vector<32x64xf32>
    %c0_32 = arith.constant 0 : index
    %c0_33 = arith.constant 0 : index
    %108 = vector.load %arg4[%c0_32, %c0_33] : memref<1x64xf32, #tpu.memory_space<vmem>>, vector<1x64xf32>
    %109 = vector.broadcast %108 : vector<1x64xf32> to vector<32x64xf32>
    %110 = arith.addf %107, %109 : vector<32x64xf32>
    %c0_34 = arith.constant 0 : index
    %c0_35 = arith.constant 0 : index
    %c0_36 = arith.constant 0 : index
    %111 = vector.load %arg5[%c0_34, %c0_35, %c0_36] : memref<1x32x64xf32, #tpu.memory_space<vmem>>, vector<1x32x64xf32>
    %112 = vector.shape_cast %111 : vector<1x32x64xf32> to vector<32x64xf32>
    %113 = vector.shape_cast %110 : vector<32x64xf32> to vector<1x32x64xf32>
    tpu.vector_store %arg5[%c0_34, %c0_35, %c0_36], %113 {strides = array<i32>} : memref<1x32x64xf32, #tpu.memory_space<vmem>>, vector<1x32x64xf32>,
    return
  }
  func.func @transform_0(%arg0: i32) -> (i32, i32, i32) {
    %c0_i32 = arith.constant 0 : i32
    %c0_i32_0 = arith.constant 0 : i32
    %c0_i32_1 = arith.constant 0 : i32
    return %arg0, %c0_i32, %c0_i32_0 : i32, i32, i32
  }
  func.func @transform_1(%arg0: i32) -> (i32, i32) {
    %c0_i32 = arith.constant 0 : i32
    %c0_i32_0 = arith.constant 0 : i32
    %c0_i32_1 = arith.constant 0 : i32
    return %c0_i32, %c0_i32_0 : i32, i32
  }
  func.func @transform_2(%arg0: i32) -> (i32, i32) {
    %c0_i32 = arith.constant 0 : i32
    %c0_i32_0 = arith.constant 0 : i32
    %c0_i32_1 = arith.constant 0 : i32
    return %c0_i32, %c0_i32_0 : i32, i32
  }
  func.func @transform_3(%arg0: i32) -> (i32, i32) {
    %c0_i32 = arith.constant 0 : i32
    %c0_i32_0 = arith.constant 0 : i32
    %c0_i32_1 = arith.constant 0 : i32
    return %c0_i32, %c0_i32_0 : i32, i32
  }
  func.func @transform_4(%arg0: i32) -> (i32, i32, i32) {
    %c0_i32 = arith.constant 0 : i32
    %c0_i32_0 = arith.constant 0 : i32
    %c0_i32_1 = arith.constant 0 : i32
    return %arg0, %c0_i32, %c0_i32_0 : i32, i32, i32
  }
}

</mosaic_0001>

<bundles_post_ra>
// kernel: tpu_custom_call.1
= control target key start
LH: loop header
LB: loop body
LE: loop exit
PB: predicated region body
PF: predicated region fallthrough
CT: control target
= control target key end

     0   :  { %9 = vsyncpa [#allocation3], 0  ;;  %s2400_s0 = inlined_call_operand.hbm [shape: f32[2,32,64], index: 0, kind: input, shape index: {}]   ;;  %s2401_s1 = inlined_call_operand.hbm [shape: bf16[64,192], index: 1, kind: input, shape index: {}]   ;;  %s2402_s2 = inlined_call_operand.hbm [shape: bf16[64,64], index: 2, kind: input, shape index: {}]   ;;  %s2403_s3 = inlined_call_operand.vmem [shape: f32[1,64], index: 3, kind: input, shape index: {}]   ;;  %s2404_s4 = inlined_call_operand.hbm [shape: f32[2,32,64], index: 4, kind: output, shape index: {}]  }
   0x1   :  { %11 = vsyncpa [#allocation3 + $0x1], 0 }
   0x2   :  { %12 = vsyncpa [#allocation6], 0 }
   0x3   :  { %13 = vsyncpa [#allocation4], 0 }
   0x4   :  { %15 = vsyncpa [#allocation4 + $0x1], 0  ;;  %s2023_s15 = smov 0   ;;  %s2025_s16 = smov 0  }
   0x5   :  { %s2027_s17 = smov 0   ;;  %s2029_s18 = smov 0  }
   0x6 LB: > { %s2044_s19 = sadd.s32 4294967295, %s1977_s18   ;;  %s1468_s20 = sadd.s32 4294967294, %s1977_s18   ;;  %s1977_s18 = sphi %s2029_s18, %s2425_s18   ;;  %s1973_s17 = sphi %s2027_s17, %s2424_s17   ;;  %s1969_s16 = sphi %s2025_s16, %s2423_s16   ;;  %s1965_s15 = sphi %s2023_s15, %s2422_s15  }
   0x7   : > { %p41_p0 = scmp.ne.s32.totalorder %s1969_s16, %s1965_s15  ;;  %p2405_p1 = scmp.eq.s32.totalorder %s2044_s19, 0 }
   0x8   : > { %p128_p2 = scmp.eq.s32.totalorder %s2044_s19, 1  ;;  %p134_p3 = scmp.eq.s32.totalorder %s1468_s20, 1 }
   0x9   : > { %p2053_p4 = por %p2405_p1, %p41_p0  ;;  %p1469_p5 = scmp.ge.s32.totalorder %s1977_s18, 1 }
   0xa   : > { %p2058_p6 = por %p134_p3, %p41_p0  ;;  %p141_p7 = scmp.lt.s32.totalorder %s1977_s18, 3 }
   0xb   : > { %s2409_s21 = scalar_select %p2053_p4, 1, 0 }
   0xc   : > { %s2410_s22 = scalar_select %p2058_p6, 1, 0 }
   0xd   : > { %p2063_p8 = pnand %p1469_p5, %p141_p7  ;;  %s1979_s24 = smov [#allocation5]  }
   0xe   : > { %s153_s25 = sshll.u32 %s1979_s24, 4  ;;  %s1980_s27 = smov [#allocation7]   ;;  %s154_s25 = int_to_ptr.vmem [resolvable:$true] %s153_s25 }
   0xf   : > { %s2411_s23 = scalar_select %p2063_p8, 1, 0 }
  0x10   : > { %p1679_p9 = pneg %p2063_p8  ;;  %s166_s28 = sshll.u32 %s1980_s27, 4  ;;  %s167_s28 = int_to_ptr.vmem [resolvable:$true] %s166_s28 }
  0x11   : > { %s1840_s29 = scalar_lea.vmem %s154_s25, 1024  ;;  %p1848_p5 = scmp.lt.s32.totalorder %s154_s25, %s154_s25 }
  0x12   : > { %p2072_p11 = pnand %p1679_p9, %p2405_p1  ;;  %p1841_p13 = scmp.ne.s32.totalorder %s154_s25, %s1840_s29 }
  0x13   : > { %p1849_p7 = scmp.lt.s32.totalorder %s1840_s29, %s1840_s29 }
  0x14   : > { %p1831_p12 = pneg %p2072_p11 }
  0x15   : > { %p1850_p10 = por %p1849_p7, %p1848_p5 }
  0x16   : > { %p1843_p0 = pnand %p1841_p13, %p1831_p12 }
  0x18   : > { %p1844_p3 = pneg %p1843_p0 }
  0x1a   : > { %p1851_p9 = pnand %p1850_p10, %p1844_p3 }
  0x1c   : > { %1854 = shalt.err (!%p1851_p9)
}
  0x1d   : > { %s1981_s30 = smov 128   ;;  %s1982_s5 = smov 8  }
  0x1e   : > { %1682 = dma.hbm_to_vmem [thread:$0]  (!%p2072_p11), %s2401_s1, 1024, %s154_s25, [#allocation6], %s1981_s30, %s1981_s30, %s1982_s5  }
  0x1f   : > { %s1866_s8 = scalar_lea.vmem %s167_s28, 512  ;;  %p1874_p10 = scmp.lt.s32.totalorder %s167_s28, %s167_s28 }
  0x20   : > { %p1867_p13 = scmp.ne.s32.totalorder %s167_s28, %s1866_s8  ;;  %p1875_p3 = scmp.lt.s32.totalorder %s1866_s8, %s1866_s8 }
  0x22   : > { %p1869_p0 = pnand %p1867_p13, %p1831_p12  ;;  %p1876_p7 = por %p1875_p3, %p1874_p10 }
  0x24   : > { %p1870_p5 = pneg %p1869_p0 }
  0x26   : > { %p1877_p9 = pnand %p1876_p7, %p1870_p5 }
  0x28   : > { %1880 = shalt.err (!%p1877_p9)
}
  0x29   : > { %s1983_s9 = smov 64   ;;  %s1984_s10 = smov 4  }
  0x2a   : > { %1685 = dma.hbm_to_vmem [thread:$0]  (!%p2072_p11), %s2402_s2, 512, %s167_s28, [#allocation6], %s1983_s9, %s1983_s9, %s1984_s10  }
  0x2b   : > { %s2098_s13 = sadd.s32 1, %s1977_s18   ;;  %s28_s20 = sadd.s32 1, %s1973_s17 }
  0x2c   : > { %s25_s14 = ssub.s32 %s1977_s18, %s2098_s13  ;;  %p35_p13 = scmp.ne.s32.totalorder %s1973_s17, %s1969_s16 }
  0x2d   : > { %p26_p12 = scmp.eq.s32.totalorder %s25_s14, 0  ;;  %p36_p0 = scmp.eq.s32.totalorder %s1977_s18, 0 }
  0x2e   : > { %p2111_p10 = por %p128_p2, %p35_p13  ;;  %p1696_p3 = scmp.lt.s32.totalorder %s1977_s18, 2 }
  0x2f   : > { %s2107_s24 = scalar_select %p26_p12, %s1973_s17, %s28_s20  }
  0x30   : > { %p37_p5 = por %p36_p0, %p35_p13  ;;  %s183_s26 = sand.u32 1, %s1973_s17  }
  0x31   : > { %s2413_s25 = scalar_select %p2111_p10, 1, 0 }
  0x32   : > { %s1473_s27 = sshll.u32 %s183_s26, 5  ;;  %s1525_s28 = sshll.u32 %s1977_s18, 9 }
  0x33   : > { %s2121_s7 = scalar_lea.hbm %s2400_s0, %s1525_s28  ;;  %s187_s8 = scalar_lea.vmem [#allocation2], %s1473_s27 }
  0x34   : > { %s194_s9 = sshll.u32 %s187_s8, 4  ;;  %p2125_p2 = pnand %p1696_p3, %p37_p5  ;;  %s2123_s9 = int_to_ptr.vmem [resolvable:$true] %s194_s9 }
  0x35   : > { %s2129_s11 = scalar_lea.sflag [#allocation3], %s183_s26  ;;  %s1881_s12 = scalar_lea.hbm %s2121_s7, 512 }
  0x36   : > { %p1882_p11 = scmp.ne.s32.totalorder %s2121_s7, %s1881_s12  ;;  %p1883_p7 = pneg %p2125_p2 }
  0x37   : > { %s1886_s27 = scalar_lea.hbm %s2400_s0, 1024  ;;  %p1887_p13 = scmp.lt.s32.totalorder %s2121_s7, %s2400_s0 }
  0x38   : > { %p1884_p9 = pnand %p1883_p7, %p1882_p11  ;;  %p1888_p0 = scmp.lt.s32.totalorder %s1886_s27, %s1881_s12 }
  0x3a   : > { %p1885_p12 = pneg %p1884_p9  ;;  %p1889_p5 = por %p1888_p0, %p1887_p13 }
  0x3c   : > { %p1890_p3 = pnand %p1889_p5, %p1885_p12 }
  0x3e   : > { %1893 = shalt.err (!%p1890_p3)
}
  0x3f   : > { %s1894_s26 = scalar_lea.vmem %s2123_s9, 512  ;;  %s1985_s6 = smov [#allocation2]  }
  0x40   : > { %p1895_p1 = scmp.ne.s32.totalorder %s2123_s9, %s1894_s26  ;;  %s1899_s8 = sshll.u32 %s1985_s6, 4  ;;  %s1900_s8 = int_to_ptr.vmem [resolvable:$false] %s1899_s8 }
  0x41   : > { %s1901_s14 = scalar_lea.vmem %s1900_s8, 1024  ;;  %p1902_p9 = scmp.lt.s32.totalorder %s2123_s9, %s1900_s8 }
  0x42   : > { %p1897_p6 = pnand %p1895_p1, %p1883_p7  ;;  %p1903_p10 = scmp.lt.s32.totalorder %s1901_s14, %s1894_s26 }
  0x44   : > { %p1898_p11 = pneg %p1897_p6  ;;  %p1904_p4 = por %p1903_p10, %p1902_p9 }
  0x46   : > { %p1905_p8 = pnand %p1904_p4, %p1898_p11 }
  0x48   : > { %1908 = shalt.err (!%p1905_p8)
}
  0x49   : > { %1689 = dma.hbm_to_vmem [thread:$0]  (!%p2125_p2), %s2121_s7, 512, %s2123_s9, %s2129_s11, %s1981_s30, %s1981_s30, %s1982_s5  }
  0x4a   : > { %p2415_p1 = scmp.ne.s32.totalorder %s2411_s23, 0 }
  0x4b   : > { %s2156_s12 = sand.u32 (!%p2415_p1), 1, %s1969_s16   ;;  %p2416_p4 = scmp.ne.s32.totalorder (!%p2415_p1), %s2409_s21, 0 }
  0x4c   : > { %206 = sbr.rel (%p2415_p1) target bundleno = 2359 (0x937), region = 36  ;;  %s1477_s20 = sshll.u32 (!%p2415_p1), %s2156_s12, 5 }
  0x4d   : > { %s209_s27 = scalar_lea.sflag (!%p2415_p1), [#allocation3], %s2156_s12  ;;  %s212_s10 = scalar_lea.vmem (!%p2415_p1), [#allocation2], %s1477_s20 }
  0x51   : > { %1952 = dma.done.wait (%p2416_p4), %s209_s27, 512  }
  0x52   : > { %1954 = vsyncadd (%p2416_p4), %s209_s27, 4294966784  ;;  %p2417_p6 = scmp.eq.s32.totalorder %s2044_s19, 0 }
  0x54   : > { %1956 = dma.done.wait (%p2417_p6), [#allocation6], 1536   ;;  %p2418_p8 = pmov %p2417_p6 }
  0x55   : > { %v1986_v0 = vmov 0   ;;  %v1749_v1 = vld [vmem:[#allocation5 + $0x34] ss:$8 sps:$4 sm:$0xff]   ;;  %v1751_v2 = vld [vmem:[#allocation5 + $0x30] ss:$8 sps:$4 sm:$0xff]   ;;  %v246_v9 = vld [vmem:[%s212_s10] sm:$0xff]  ;;  %v360_v37 = vlaneseq }
  0x56   : > { %1958 = vsyncadd (%p2418_p8), [#allocation6], 4294965760  ;;  %339 = vmatprep.mubr.bf16.mxu0 %v1986_v0  ;;  %315 = vmatprep.subr.bf16.mxu0 %v1749_v1  ;;  %v1752_v3 = vld [vmem:[#allocation5 + $0x24] ss:$8 sps:$4 sm:$0xff]   ;;  %v1754_v4 = vld [vmem:[#allocation5 + $0x20] ss:$8 sps:$4 sm:$0xff]  }
  0x57   : > { %316 = vmatpush1.bf16.msra.mxu0 %v1751_v2  ;;  %v1755_v5 = vld [vmem:[#allocation5 + $0x14] ss:$8 sps:$4 sm:$0xff]   ;;  %v1757_v6 = vld [vmem:[#allocation5 + $0x10] ss:$8 sps:$4 sm:$0xff]   ;;  %v1758_v7 = vld [vmem:[#allocation5 + $0x4] ss:$8 sps:$4 sm:$0xff]  }
  0x58   : > { %317 = vmatprep.subr.bf16.mxu0 %v1752_v3  ;;  %v1760_v8 = vld [vmem:[#allocation5] ss:$8 sps:$4 sm:$0xff]   ;;  %vm300_vm0 = vcmask 523264   ;;  %v248_v12 = vld [vmem:[%s212_s10 + $0x10] sm:$0xff]  ;;  %v249_v13 = vld [vmem:[%s212_s10 + $0x18] sm:$0xff]  ;;  %vm383_vm1 = vcmask 130048  }
  0x59   : > { %v247_v10 = vld [vmem:[%s212_s10 + $0x8] sm:$0xff]  ;;  %v251_v14 = vpack.c.bf16 %v249_v13, %v248_v12  ;;  %s1987_s21 = smov 48   ;;  %s1988_s23 = smov 64   ;;  %v361_v38 = vshrl.u32 %v360_v37, 7  ;;  %v366_v40 = vand.u32 127, %v360_v37  ;;  %vm445_vm6 = vcmask 261120  }
  0x5a   : > { %v250_v11 = vpack.c.bf16 %v247_v10, %v246_v9  ;;  %s1989_s30 = smov 112   ;;  %v1990_v45 = vmov -1e+30   ;;  %s1991_s5 = smov 32  }
  0x5b   : > { %318 = vmatpush1.bf16.msra.mxu0 %v1754_v4  ;;  %v363_v39 = vadd.s32 16, %v361_v38  ;;  %vm367_vm2 = vcmp.le.s32.totalorder %v366_v40, %v361_v38  ;;  %v362_v41 = vadd.s32 8, %v361_v38  ;;  %v364_v42 = vadd.s32 24, %v361_v38  ;;  %s1992_s7 = smov 96   ;;  %s1993_s9 = smov 16  }
  0x5c   : > { %319 = vmatprep.subr.bf16.mxu0 %v1755_v5  ;;  %v2206_v46 = vsel %vm367_vm2, 0.0, %v1990_v45  ;;  %s1994_s11 = smov 80   ;;  %s244_s26 = scalar_lea.vmem [#allocation8], %s1477_s20 }
  0x5d   : > { %vm369_vm3 = vcmp.le.s32.totalorder %v366_v40, %v363_v39  ;;  %vm368_vm4 = vcmp.le.s32.totalorder %v366_v40, %v362_v41  ;;  %vm370_vm5 = vcmp.le.s32.totalorder %v366_v40, %v364_v42  ;;  %s1376_s6 = sshll.u32 %s244_s26, 4  ;;  %s1526_s8 = sshll.u32 %s2044_s19, 9  ;;  %s2349_s6 = int_to_ptr.vmem [resolvable:$true] %s1376_s6 }
  0x5e   : > { %v2208_v47 = vsel %vm369_vm3, 0.0, %v1990_v45  ;;  %v2211_v52 = vsel %vm368_vm4, 0.0, %v1990_v45  ;;  %v2215_v55 = vsel %vm370_vm5, 0.0, %v1990_v45  ;;  %s2355_s27 = scalar_lea.hbm %s2404_s4, %s1526_s8  ;;  %s1363_s19 = scalar_lea.sflag [#allocation4], %s2156_s12 }
  0x5f   : > { %320 = vmatpush1.bf16.msra.mxu0 %v1757_v6  ;;  %s1909_s10 = scalar_lea.vmem %s2349_s6, 512  ;;  %p2419_p2 = scmp.ne.s32.totalorder %s2413_s25, 0 }
  0x60   : > { %321 = vmatprep.subr.bf16.mxu0 %v1758_v7  ;;  %p1910_p10 = scmp.ne.s32.totalorder %s2349_s6, %s1909_s10 }
  0x62   : > { %p1911_p7 = pnand %p1910_p10, %p2419_p2 }
  0x63   : > { %322 = vmatpush1.bf16.msra.mxu0 %v1760_v8 }
  0x64   : > { %p1912_p12 = pneg %p1911_p7 }
  0x66   : > { %1489 = vmatmul.mubr.msk.bf16.vlgmr.msra.gmra.mxu0 %vm300_vm0, %v250_v11 }
  0x67   : > { %349 = vmatprep.mubr.bf16.mxu0 %v1986_v0 }
  0x6e   : > { %1490 = vmatmul.mubr.msk.bf16.gmra.mxu0 %vm300_vm0, %v251_v14 }
 0x126   : > { %v341_v15 = vpop.f32.mrf.mxu0 }
 0x128   : > { %v343_v16 = vpop.f32.mrf.mxu0 }
 0x12a   : > { %v345_v17 = vpop.f32.mrf.mxu0 }
 0x12b   : > { %v2172_v18 = vpack.c.bf16 %v345_v17, %v341_v15 }
 0x12c   : > { %v347_v19 = vpop.f32.mrf.mxu0 }
 0x12d   : > { %v2174_v20 = vpack.c.bf16 %v347_v19, %v343_v16  ;;  %1575 = vmatprep.mubr.msk.bf16.mxu1 %vm383_vm1, %v2172_v18 }
 0x12e   : > { %v351_v21 = vpop.f32.mrf.mxu0 }
 0x130   : > { %v353_v22 = vpop.f32.mrf.mxu0 }
 0x132   : > { %v355_v23 = vpop.f32.mrf.mxu0 }
 0x133   : > { %v2178_v24 = vpack.c.bf16 %v355_v23, %v351_v21 }
 0x134   : > { %v357_v31 = vpop.f32.mrf.mxu0 }
 0x135   : > { %559 = vrot.lane.b32.xlu1 %v2178_v24, %s1987_s21  ;;  %381 = vrot.lane.b32.xlu0 %v2178_v24, %s1988_s23  ;;  %v2194_v33 = vpack.c.bf16 %v357_v31, %v353_v22 }
 0x139   : > { %557 = vrot.lane.b32.xlu1 %v2172_v18, %s1987_s21  ;;  %379 = vrot.lane.b32.xlu0 %v2172_v18, %s1988_s23  ;;  %s1995_s21 = smov [#allocation8]  }
 0x13a   : > { %s1913_s23 = sshll.u32 %s1995_s21, 4  ;;  %s1914_s23 = int_to_ptr.vmem [resolvable:$false] %s1913_s23 }
 0x13b   : > { %p1916_p13 = scmp.lt.s32.totalorder %s2349_s6, %s1914_s23 }
 0x13d   : > { %555 = vrot.lane.b32.xlu1 %v2178_v24, %s1989_s30  ;;  %553 = vrot.lane.b32.xlu0 %v2172_v18, %s1989_s30 }
 0x1a7   : > { %v560_v25 = vpop.permute.xlu1 %559  ;;  %v382_v26 = vpop.permute.xlu0 %381 }
 0x1a8   : > { %v571_v27 = vsel %vm383_vm1, %v560_v25, 0  ;;  %1659 = vmatprep.subr.msk.bf16.mxu1 %vm383_vm1, %v382_v26  ;;  %1661 = vmatprep.subr.msk.bf16.mxu0 %vm383_vm1, %v560_v25  ;;  %v394_v28 = vsel %vm383_vm1, %v382_v26, 0 }
 0x1a9   : > { %1572 = vmatpush3.bf16.xpose.msra.mxu1 %v394_v28  ;;  %1588 = vmatpush3.bf16.xpose.msra.mxu0 %v571_v27 }
 0x1ab   : > { %v558_v29 = vpop.permute.xlu1 %557  ;;  %v380_v30 = vpop.permute.xlu0 %379 }
 0x1ac   : > { %1660 = vmatprep.subr.msk.bf16.mxu1 %vm383_vm1, %v380_v30  ;;  %1662 = vmatprep.subr.msk.bf16.mxu0 %vm383_vm1, %v558_v29  ;;  %v568_v34 = vsel %vm383_vm1, %v558_v29, 0  ;;  %v391_v35 = vsel %vm383_vm1, %v380_v30, 0 }
 0x1af   : > { %v554_v32 = vpop.permute.xlu0 %553  ;;  %v556_v36 = vpop.permute.xlu1 %555 }
 0x1b0   : > { %1591 = vmatprep.mubr.msk.bf16.mxu0 %vm383_vm1, %v554_v32 }
 0x1b1   : > { %1574 = vmatpush3.bf16.xpose.msra.mxu1 %v391_v35  ;;  %1590 = vmatpush3.bf16.xpose.msra.mxu0 %v568_v34 }
 0x1b2   : > { %1579 = vmatprep.subr.bf16.mxu1 %v2194_v33 }
 0x1b8   : > { %1576 = vmatmul.mubr.msk.bf16.vlgmr.msra.gmra.mxu1 %vm383_vm1, %v2178_v24  ;;  %1592 = vmatmul.mubr.msk.bf16.vlgmr.msra.gmra.mxu0 %vm383_vm1, %v556_v36 }
 0x1b9   : > { %1580 = vmatpush3.bf16.msra.mxu1 %v2194_v33 }
 0x1ba   : > { %1581 = vmatprep.subr.bf16.mxu1 %v2174_v20 }
 0x1bd   : > { %1582 = vmatpush3.bf16.msra.mxu1 %v2174_v20 }
 0x278   : > { %v1577_v43 = vpop.f32.mrf.mxu1  ;;  %v1593_v44 = vpop.f32.mrf.mxu0 }
 0x279   : > { %v439_v53 = vadd.f32 %v1577_v43, %v2208_v47  ;;  %v616_v0 = vadd.f32 %v1593_v44, %v2208_v47 }
 0x27a   : > { %v430_v48 = vpop.f32.mrf.mxu1  ;;  %v607_v49 = vpop.f32.mrf.mxu0 }
 0x27b   : > { %v431_v50 = vadd.f32 %v430_v48, %v2206_v46  ;;  %v608_v59 = vadd.f32 %v607_v49, %v2206_v46  ;;  %v452_v62 = vsel %vm445_vm6, %v439_v53, -inf  ;;  %v628_v6 = vsel %vm445_vm6, %v616_v0, -inf }
 0x27c   : > { %v1578_v51 = vpop.f32.mrf.mxu1  ;;  %v1594_v56 = vpop.f32.mrf.mxu0 }
 0x27d   : > { %v446_v54 = vsel %vm445_vm6, %v431_v50, -inf  ;;  %v442_v60 = vadd.f32 %v1578_v51, %v2215_v55  ;;  %v622_v3 = vsel %vm445_vm6, %v608_v59, -inf  ;;  %v619_v4 = vadd.f32 %v1594_v56, %v2215_v55  ;;  %v1761_v56 = vld [vmem:[#allocation7 + $0x8] sm:$0xff]  }
 0x27e   : > { %v433_v57 = vpop.f32.mrf.mxu1  ;;  %447 = vmax.xlane.f32.xlu0 %v446_v54  ;;  %v610_v63 = vpop.f32.mrf.mxu0  ;;  %1603 = vmatprep.subr.bf16.mxu0 %v1761_v56 }
 0x27f   : > { %v434_v58 = vadd.f32 %v433_v57, %v2211_v52  ;;  %v611_v1 = vadd.f32 %v610_v63, %v2211_v52  ;;  %v455_v2 = vsel %vm445_vm6, %v442_v60, -inf  ;;  %v631_v7 = vsel %vm445_vm6, %v619_v4, -inf  ;;  %1604 = vmatpush3.bf16.msra.mxu0 %v1761_v56 }
 0x281   : > { %v449_v61 = vsel %vm445_vm6, %v434_v58, -inf  ;;  %v625_v5 = vsel %vm445_vm6, %v611_v1, -inf }
 0x282   : > { %450 = vmax.xlane.f32.xlu1 %v449_v61  ;;  %453 = vmax.xlane.f32.xlu0 %v452_v62 }
 0x286   : > { %456 = vmax.xlane.f32.xlu0 %v455_v2  ;;  %623 = vmax.xlane.f32.xlu1 %v622_v3 }
 0x28a   : > { %626 = vmax.xlane.f32.xlu0 %v625_v5  ;;  %629 = vmax.xlane.f32.xlu1 %v628_v6 }
 0x28e   : > { %632 = vmax.xlane.f32.xlu0 %v631_v7 }
 0x307   : > { %v448_v8 = vpop.xlane.xlu0 %447 }
 0x308   : > { %v458_v17 = vsub.f32 %v431_v50, %v448_v8 }
 0x30a   : > { %v462_v26 = vmul.f32 1.442695, %v458_v17 }
 0x30b   : > { %v451_v9 = vpop.xlane.xlu1 %450  ;;  %v454_v10 = vpop.xlane.xlu0 %453 }
 0x30c   : > { %v460_v11 = vsub.f32 %v439_v53, %v454_v10  ;;  %v459_v23 = vsub.f32 %v434_v58, %v451_v9 }
 0x30e   : > { %v466_v12 = vmul.f32 1.442695, %v460_v11  ;;  %v464_v30 = vmul.f32 1.442695, %v459_v23 }
 0x30f   : > { %v457_v13 = vpop.xlane.xlu0 %456  ;;  %v624_v14 = vpop.xlane.xlu1 %623 }
 0x310   : > { %v461_v15 = vsub.f32 %v442_v60, %v457_v13  ;;  %1765 = vpow2.f32 %v466_v12  ;;  %v634_v27 = vsub.f32 %v608_v59, %v624_v14 }
 0x312   : > { %v468_v16 = vmul.f32 1.442695, %v461_v15  ;;  %v638_v34 = vmul.f32 1.442695, %v634_v27 }
 0x313   : > { %v627_v19 = vpop.xlane.xlu0 %626  ;;  %v630_v21 = vpop.xlane.xlu1 %629 }
 0x314   : > { %1767 = vpow2.f32 %v468_v16  ;;  %v636_v22 = vsub.f32 %v616_v0, %v630_v21  ;;  %v635_v31 = vsub.f32 %v611_v1, %v627_v19 }
 0x316   : > { %v642_v25 = vmul.f32 1.442695, %v636_v22  ;;  %v640_v36 = vmul.f32 1.442695, %v635_v31 }
 0x317   : > { %v633_v28 = vpop.xlane.xlu0 %632 }
 0x318   : > { %v637_v29 = vsub.f32 %v619_v4, %v633_v28  ;;  %1769 = vpow2.f32 %v642_v25  ;;  %v1762_v25 = vld [vmem:[#allocation7] sm:$0xff]  }
 0x319   : > { %1771 = vpow2.f32 %v462_v26 }
 0x31a   : > { %v644_v32 = vmul.f32 1.442695, %v637_v29 }
 0x31c   : > { %1773 = vpow2.f32 %v644_v32 }
 0x31d   : > { %v2230_v35 = vpop.eup %1765  ;;  %1775 = vpow2.f32 %v464_v30 }
 0x31e   : > { %1777 = vpow2.f32 %v638_v34  ;;  %v476_v37 = vsel %vm445_vm6, %v2230_v35, 0.0 }
 0x31f   : > { %477 = vadd.xlane.f32.xlu1 %v476_v37  ;;  %1779 = vpow2.f32 %v640_v36 }
 0x321   : > { %v2234_v38 = vpop.eup %1767 }
 0x322   : > { %v479_v39 = vsel %vm445_vm6, %v2234_v38, 0.0 }
 0x323   : > { %480 = vadd.xlane.f32.xlu0 %v479_v39 }
 0x325   : > { %v2238_v40 = vpop.eup %1769 }
 0x326   : > { %v652_v41 = vsel %vm445_vm6, %v2238_v40, 0.0  ;;  %v1772_v42 = vpop.eup %1771 }
 0x327   : > { %653 = vadd.xlane.f32.xlu1 %v652_v41  ;;  %v470_v48 = vsel %vm445_vm6, %v1772_v42, 0.0 }
 0x329   : > { %v2242_v43 = vpop.eup %1773 }
 0x32a   : > { %v655_v44 = vsel %vm445_vm6, %v2242_v43, 0.0  ;;  %v1776_v45 = vpop.eup %1775 }
 0x32b   : > { %656 = vadd.xlane.f32.xlu0 %v655_v44  ;;  %v1778_v49 = vpop.eup %1777  ;;  %471 = vadd.xlane.f32.xlu1 %v470_v48  ;;  %v473_v50 = vsel %vm445_vm6, %v1776_v45, 0.0 }
 0x32c   : > { %v1780_v51 = vpop.eup %1779  ;;  %v646_v53 = vsel %vm445_vm6, %v1778_v49, 0.0 }
 0x32d   : > { %v649_v54 = vsel %vm445_vm6, %v1780_v51, 0.0 }
 0x32f   : > { %474 = vadd.xlane.f32.xlu0 %v473_v50  ;;  %647 = vadd.xlane.f32.xlu1 %v646_v53 }
 0x333   : > { %650 = vadd.xlane.f32.xlu0 %v649_v54 }
 0x340   : > { %672 = vrot.lane.b32.xlu1 %v2194_v33, %s1989_s30 }
 0x344   : > { %863 = vrot.lane.b32.xlu1 %v2178_v24, %s1991_s5 }
 0x348   : > { %861 = vrot.lane.b32.xlu1 %v2172_v18, %s1991_s5 }
 0x349   : > { %670 = vrot.lane.b32.xlu0 %v2174_v20, %s1989_s30  ;;  %s1915_s30 = scalar_lea.vmem %s1914_s23, 1024 }
 0x34a   : > { %p1917_p0 = scmp.lt.s32.totalorder %s1915_s30, %s1909_s10 }
 0x34c   : > { %859 = vrot.lane.b32.xlu1 %v2178_v24, %s1992_s7  ;;  %p1918_p5 = por %p1917_p0, %p1916_p13 }
 0x34d   : > { %857 = vrot.lane.b32.xlu0 %v2172_v18, %s1992_s7 }
 0x34e   : > { %p1919_p3 = pnand %p1918_p5, %p1912_p12 }
 0x350   : > { %1106 = vrot.lane.b32.xlu1 %v2172_v18, %s1993_s9 }
 0x351   : > { %1108 = vrot.lane.b32.xlu0 %v2178_v24, %s1993_s9 }
 0x354   : > { %1104 = vrot.lane.b32.xlu1 %v2178_v24, %s1994_s11 }
 0x355   : > { %1102 = vrot.lane.b32.xlu0 %v2172_v18, %s1994_s11 }
 0x3a8   : > { %v478_v57 = vpop.xlane.xlu1 %477 }
 0x3ac   : > { %v481_v58 = vpop.xlane.xlu0 %480 }
 0x3ad   : > { %1781 = vrcp.f32 %v481_v58 }
 0x3b0   : > { %v654_v59 = vpop.xlane.xlu1 %653 }
 0x3b4   : > { %v657_v60 = vpop.xlane.xlu0 %656  ;;  %v472_v61 = vpop.xlane.xlu1 %471 }
 0x3b5   : > { %1783 = vrcp.f32 %v472_v61 }
 0x3b6   : > { %1785 = vrcp.f32 %v478_v57 }
 0x3b8   : > { %v475_v62 = vpop.xlane.xlu0 %474  ;;  %v648_v63 = vpop.xlane.xlu1 %647 }
 0x3b9   : > { %1787 = vrcp.f32 %v475_v62 }
 0x3ba   : > { %1789 = vrcp.f32 %v648_v63  ;;  %v1782_v18 = vpop.eup %1781 }
 0x3bb   : > { %v489_v5 = vmul.f32 %v1782_v18, %v2234_v38 }
 0x3bc   : > { %v651_v0 = vpop.xlane.xlu0 %650  ;;  %v673_v1 = vpop.permute.xlu1 %672 }
 0x3bd   : > { %1791 = vrcp.f32 %v651_v0  ;;  %1595 = vmatprep.subr.bf16.mxu1 %v673_v1 }
 0x3be   : > { %1793 = vrcp.f32 %v657_v60 }
 0x3bf   : > { %1795 = vrcp.f32 %v654_v59 }
 0x3c0   : > { %v864_v24 = vpop.permute.xlu1 %863  ;;  %v671_v17 = vpop.permute.xlu0 %670 }
 0x3c1   : > { %1663 = vmatprep.subr.msk.bf16.mxu0 %vm383_vm1, %v864_v24  ;;  %v875_v39 = vsel %vm383_vm1, %v864_v24, 0 }
 0x3c2   : > { %v1784_v2 = vpop.eup %1783 }
 0x3c3   : > { %v1786_v3 = vpop.eup %1785  ;;  %v486_v6 = vmul.f32 %v1784_v2, %v1772_v42 }
 0x3c4   : > { %v488_v9 = vmul.f32 %v1786_v3, %v2230_v35  ;;  %v862_v41 = vpop.permute.xlu1 %861 }
 0x3c5   : > { %v872_v42 = vsel %vm383_vm1, %v862_v41, 0 }
 0x3c6   : > { %v1788_v4 = vpop.eup %1787  ;;  %v491_v12 = vpack.c.bf16 %v489_v5, %v488_v9 }
 0x3c7   : > { %v487_v7 = vmul.f32 %v1788_v4, %v1776_v45  ;;  %v1790_v8 = vpop.eup %1789 }
 0x3c8   : > { %v662_v14 = vmul.f32 %v1790_v8, %v1778_v49  ;;  %v860_v44 = vpop.permute.xlu1 %859 }
 0x3c9   : > { %v490_v10 = vpack.c.bf16 %v487_v7, %v486_v6 }
 0x3ca   : > { %v1792_v11 = vpop.eup %1791 }
 0x3cb   : > { %v1794_v13 = vpop.eup %1793  ;;  %1583 = vmatprep.mubr.msk.bf16.mxu1 %vm445_vm6, %v490_v10  ;;  %v663_v15 = vmul.f32 %v1792_v11, %v1780_v51 }
 0x3cc   : > { %1584 = vmatmul.mubr.msk.bf16.vlgmr.msra.gmra.mxu1 %vm445_vm6, %v491_v12  ;;  %v1796_v16 = vpop.eup %1795  ;;  %v665_v21 = vmul.f32 %v1794_v13, %v2242_v43  ;;  %v1107_v49 = vpop.permute.xlu1 %1106 }
 0x3cd   : > { %1596 = vmatpush3.bf16.msra.mxu1 %v673_v1  ;;  %v666_v19 = vpack.c.bf16 %v663_v15, %v662_v14  ;;  %v664_v22 = vmul.f32 %v1796_v16, %v2238_v40  ;;  %v858_v40 = vpop.permute.xlu0 %857  ;;  %v1117_v50 = vsel %vm383_vm1, %v1107_v49, 0 }
 0x3ce   : > { %1597 = vmatprep.subr.bf16.mxu1 %v671_v17 }
 0x3cf   : > { %1599 = vmatprep.mubr.msk.bf16.mxu1 %vm445_vm6, %v666_v19  ;;  %v667_v23 = vpack.c.bf16 %v665_v21, %v664_v22 }
 0x3d0   : > { %v1105_v51 = vpop.permute.xlu1 %1104 }
 0x3d1   : > { %1598 = vmatpush3.bf16.msra.mxu1 %v671_v17  ;;  %v1109_v43 = vpop.permute.xlu0 %1108 }
 0x3d2   : > { %1609 = vmatprep.subr.bf16.mxu1 %v1762_v25  ;;  %v1120_v45 = vsel %vm383_vm1, %v1109_v43, 0 }
 0x3d4   : > { %1600 = vmatmul.mubr.msk.bf16.vlgmr.msra.gmra.mxu1 %vm445_vm6, %v667_v23 }
 0x3d5   : > { %1610 = vmatpush3.bf16.msra.mxu1 %v1762_v25  ;;  %v1103_v48 = vpop.permute.xlu0 %1102 }
 0x48c   : > { %v1585_v26 = vpop.f32.mrf.mxu1 }
 0x48e   : > { %v534_v27 = vpop.f32.mrf.mxu1 }
 0x490   : > { %v1586_v28 = vpop.f32.mrf.mxu1 }
 0x491   : > { %v550_v31 = vpack.c.bf16 %v1586_v28, %v1585_v26 }
 0x492   : > { %v537_v29 = vpop.f32.mrf.mxu1 }
 0x493   : > { %v549_v30 = vpack.c.bf16 %v537_v29, %v534_v27 }
 0x494   : > { %v1601_v32 = vpop.f32.mrf.mxu1 }
 0x495   : > { %1611 = vmatprep.mubr.msk.bf16.mxu1 %vm383_vm1, %v549_v30 }
 0x496   : > { %v716_v34 = vpop.f32.mrf.mxu1  ;;  %1612 = vmatmul.mubr.msk.bf16.vlgmr.msra.gmra.mxu1 %vm383_vm1, %v550_v31 }
 0x498   : > { %v1602_v35 = vpop.f32.mrf.mxu1 }
 0x499   : > { %v732_v38 = vpack.c.bf16 %v1602_v35, %v1601_v32 }
 0x49a   : > { %v719_v36 = vpop.f32.mrf.mxu1 }
 0x49b   : > { %v731_v37 = vpack.c.bf16 %v719_v36, %v716_v34 }
 0x49d   : > { %1605 = vmatprep.mubr.msk.bf16.mxu0 %vm383_vm1, %v731_v37 }
 0x49e   : > { %1606 = vmatmul.mubr.msk.bf16.vlgmr.msra.gmra.mxu0 %vm383_vm1, %v732_v38 }
 0x49f   : > { %1616 = vmatpush3.bf16.xpose.msra.mxu0 %v875_v39  ;;  %1619 = vmatprep.mubr.msk.bf16.mxu0 %vm383_vm1, %v858_v40 }
 0x4a0   : > { %1664 = vmatprep.subr.msk.bf16.mxu0 %vm383_vm1, %v862_v41 }
 0x4a7   : > { %1618 = vmatpush3.bf16.xpose.msra.mxu0 %v872_v42 }
 0x4a8   : > { %1665 = vmatprep.subr.msk.bf16.mxu0 %vm383_vm1, %v1109_v43 }
 0x4ae   : > { %1620 = vmatmul.mubr.msk.bf16.vlgmr.msra.gmra.mxu0 %vm383_vm1, %v860_v44 }
 0x4af   : > { %1638 = vmatpush3.bf16.xpose.msra.mxu0 %v1120_v45  ;;  %1641 = vmatprep.mubr.msk.bf16.mxu0 %vm383_vm1, %v1103_v48 }
 0x4b0   : > { %1666 = vmatprep.subr.msk.bf16.mxu0 %vm383_vm1, %v1107_v49 }
 0x4b7   : > { %1640 = vmatpush3.bf16.xpose.msra.mxu0 %v1117_v50 }
 0x4be   : > { %1642 = vmatmul.mubr.msk.bf16.vlgmr.msra.gmra.mxu0 %vm383_vm1, %v1105_v51 }
 0x556   : > { %v1613_v53 = vpop.f32.mrf.mxu1 }
 0x558   : > { %v842_v54 = vpop.f32.mrf.mxu1 }
 0x55a   : > { %v1614_v60 = vpop.f32.mrf.mxu1 }
 0x55e   : > { %v1607_v56 = vpop.f32.mrf.mxu0 }
 0x55f   : > { %v2290_v57 = vadd.f32 %v1613_v53, %v1607_v56 }
 0x560   : > { %v781_v58 = vpop.f32.mrf.mxu0 }
 0x561   : > { %v2292_v59 = vadd.f32 %v842_v54, %v781_v58 }
 0x562   : > { %v1608_v61 = vpop.f32.mrf.mxu0 }
 0x563   : > { %v2294_v62 = vadd.f32 %v1614_v60, %v1608_v61 }
 0x564   : > { %v2296_v63 = vpop.f32.mrf.mxu0 }
 0x56e   : > { %v1621_v0 = vpop.f32.mrf.mxu0 }
 0x56f   : > { %v920_v2 = vadd.f32 %v1621_v0, %v2208_v47 }
 0x570   : > { %v911_v1 = vpop.f32.mrf.mxu0 }
 0x571   : > { %v912_v24 = vadd.f32 %v911_v1, %v2206_v46  ;;  %v932_v8 = vsel %vm445_vm6, %v920_v2, -inf }
 0x572   : > { %v1622_v18 = vpop.f32.mrf.mxu0 }
 0x573   : > { %v926_v3 = vsel %vm445_vm6, %v912_v24, -inf  ;;  %v923_v6 = vadd.f32 %v1622_v18, %v2215_v55 }
 0x574   : > { %v914_v4 = vpop.f32.mrf.mxu0  ;;  %927 = vmax.xlane.f32.xlu0 %v926_v3 }
 0x575   : > { %v915_v5 = vadd.f32 %v914_v4, %v2211_v52  ;;  %v935_v9 = vsel %vm445_vm6, %v923_v6, -inf }
 0x577   : > { %v929_v7 = vsel %vm445_vm6, %v915_v5, -inf }
 0x578   : > { %930 = vmax.xlane.f32.xlu1 %v929_v7  ;;  %933 = vmax.xlane.f32.xlu0 %v932_v8 }
 0x57c   : > { %936 = vmax.xlane.f32.xlu0 %v935_v9 }
 0x57e   : > { %v1643_v34 = vpop.f32.mrf.mxu0 }
 0x57f   : > { %v1165_v40 = vadd.f32 %v1643_v34, %v2208_v47 }
 0x580   : > { %v1156_v35 = vpop.f32.mrf.mxu0 }
 0x581   : > { %v1157_v37 = vadd.f32 %v1156_v35, %v2206_v46  ;;  %v1177_v44 = vsel %vm445_vm6, %v1165_v40, -inf }
 0x582   : > { %v1644_v36 = vpop.f32.mrf.mxu0 }
 0x583   : > { %v1171_v41 = vsel %vm445_vm6, %v1157_v37, -inf  ;;  %v1168_v42 = vadd.f32 %v1644_v36, %v2215_v55 }
 0x584   : > { %v1159_v38 = vpop.f32.mrf.mxu0 }
 0x585   : > { %v1160_v39 = vadd.f32 %v1159_v38, %v2211_v52  ;;  %v1180_v45 = vsel %vm445_vm6, %v1168_v42, -inf }
 0x587   : > { %v1174_v43 = vsel %vm445_vm6, %v1160_v39, -inf }
 0x5fd   : > { %v928_v10 = vpop.xlane.xlu0 %927 }
 0x5fe   : > { %v938_v11 = vsub.f32 %v912_v24, %v928_v10 }
 0x600   : > { %v942_v17 = vmul.f32 1.442695, %v938_v11 }
 0x601   : > { %v931_v12 = vpop.xlane.xlu1 %930  ;;  %v934_v13 = vpop.xlane.xlu0 %933 }
 0x602   : > { %v940_v14 = vsub.f32 %v920_v2, %v934_v13  ;;  %v939_v15 = vsub.f32 %v915_v5, %v931_v12 }
 0x604   : > { %v946_v16 = vmul.f32 1.442695, %v940_v14  ;;  %v944_v22 = vmul.f32 1.442695, %v939_v15 }
 0x605   : > { %v937_v19 = vpop.xlane.xlu0 %936 }
 0x606   : > { %v941_v21 = vsub.f32 %v923_v6, %v937_v19  ;;  %1797 = vpow2.f32 %v946_v16 }
 0x607   : > { %1799 = vpow2.f32 %v942_v17 }
 0x608   : > { %v948_v23 = vmul.f32 1.442695, %v941_v21 }
 0x60a   : > { %1801 = vpow2.f32 %v948_v23  ;;  %v845_v23 = vpop.f32.mrf.mxu1 }
 0x60b   : > { %1803 = vpow2.f32 %v944_v22  ;;  %v1763_v22 = vld [vmem:[#allocation7 + $0x10] sm:$0xff]  }
 0x613   : > { %v1798_v25 = vpop.eup %1797 }
 0x614   : > { %v956_v26 = vsel %vm445_vm6, %v1798_v25, 0.0  ;;  %v1800_v27 = vpop.eup %1799 }
 0x615   : > { %957 = vadd.xlane.f32.xlu1 %v956_v26  ;;  %v950_v31 = vsel %vm445_vm6, %v1800_v27, 0.0 }
 0x617   : > { %v1802_v28 = vpop.eup %1801 }
 0x618   : > { %v959_v29 = vsel %vm445_vm6, %v1802_v28, 0.0  ;;  %v1804_v30 = vpop.eup %1803 }
 0x619   : > { %960 = vadd.xlane.f32.xlu0 %v959_v29  ;;  %951 = vadd.xlane.f32.xlu1 %v950_v31  ;;  %v953_v32 = vsel %vm445_vm6, %v1804_v30, 0.0 }
 0x61d   : > { %954 = vadd.xlane.f32.xlu0 %v953_v32 }
 0x62a   : > { %974 = vrot.lane.b32.xlu1 %v2194_v33, %s1992_s7 }
 0x633   : > { %972 = vrot.lane.b32.xlu0 %v2174_v20, %s1992_s7 }
 0x64e   : > { %1172 = vmax.xlane.f32.xlu1 %v1171_v41 }
 0x652   : > { %1175 = vmax.xlane.f32.xlu0 %v1174_v43  ;;  %1178 = vmax.xlane.f32.xlu1 %v1177_v44 }
 0x656   : > { %1181 = vmax.xlane.f32.xlu0 %v1180_v45 }
 0x69e   : > { %v958_v46 = vpop.xlane.xlu1 %957 }
 0x6a2   : > { %v961_v48 = vpop.xlane.xlu0 %960  ;;  %v952_v49 = vpop.xlane.xlu1 %951 }
 0x6a3   : > { %1805 = vrcp.f32 %v961_v48 }
 0x6a4   : > { %1807 = vrcp.f32 %v952_v49 }
 0x6a5   : > { %1809 = vrcp.f32 %v958_v46  ;;  %v1764_v46 = vld [vmem:[#allocation7 + $0x18] sm:$0xff]  }
 0x6a6   : > { %v955_v47 = vpop.xlane.xlu0 %954  ;;  %v975_v52 = vpop.permute.xlu1 %974 }
 0x6a7   : > { %1811 = vrcp.f32 %v955_v47  ;;  %1623 = vmatprep.subr.bf16.mxu1 %v975_v52 }
 0x6a8   : > { %1624 = vmatpush3.bf16.msra.mxu1 %v975_v52 }
 0x6aa   : > { %v973_v55 = vpop.permute.xlu0 %972 }
 0x6ab   : > { %1625 = vmatprep.subr.bf16.mxu1 %v973_v55 }
 0x6ac   : > { %1626 = vmatpush3.bf16.msra.mxu1 %v973_v55 }
 0x6ad   : > { %1631 = vmatprep.subr.bf16.mxu1 %v1763_v22 }
 0x6b0   : > { %v1806_v50 = vpop.eup %1805 }
 0x6b1   : > { %v1808_v51 = vpop.eup %1807  ;;  %v969_v56 = vmul.f32 %v1806_v50, %v1802_v28  ;;  %v846_v50 = vadd.f32 %v845_v23, %v2296_v63 }
 0x6b2   : > { %v1810_v53 = vpop.eup %1809  ;;  %v966_v58 = vmul.f32 %v1808_v51, %v1800_v27 }
 0x6b3   : > { %v968_v61 = vmul.f32 %v1810_v53, %v1798_v25 }
 0x6b4   : > { %v1812_v54 = vpop.eup %1811 }
 0x6b5   : > { %v967_v60 = vmul.f32 %v1812_v54, %v1804_v30  ;;  %v971_v1 = vpack.c.bf16 %v969_v56, %v968_v61 }
 0x6b7   : > { %v970_v0 = vpack.c.bf16 %v967_v60, %v966_v58 }
 0x6b9   : > { %1627 = vmatprep.mubr.msk.bf16.mxu1 %vm445_vm6, %v970_v0 }
 0x6ba   : > { %1628 = vmatmul.mubr.msk.bf16.vlgmr.msra.gmra.mxu1 %vm445_vm6, %v971_v1 }
 0x6bb   : > { %1632 = vmatpush3.bf16.msra.mxu1 %v1763_v22 }
 0x6d7   : > { %v1173_v24 = vpop.xlane.xlu1 %1172 }
 0x6d8   : > { %v1183_v18 = vsub.f32 %v1157_v37, %v1173_v24 }
 0x6da   : > { %v1187_v6 = vmul.f32 1.442695, %v1183_v18 }
 0x6db   : > { %v1176_v2 = vpop.xlane.xlu0 %1175  ;;  %v1179_v3 = vpop.xlane.xlu1 %1178 }
 0x6dc   : > { %v1185_v4 = vsub.f32 %v1165_v40, %v1179_v3  ;;  %v1184_v5 = vsub.f32 %v1160_v39, %v1176_v2 }
 0x6de   : > { %v1191_v7 = vmul.f32 1.442695, %v1185_v4  ;;  %v1189_v10 = vmul.f32 1.442695, %v1184_v5 }
 0x6df   : > { %v1182_v8 = vpop.xlane.xlu0 %1181 }
 0x6e0   : > { %v1186_v9 = vsub.f32 %v1168_v42, %v1182_v8  ;;  %1813 = vpow2.f32 %v1191_v7 }
 0x6e1   : > { %1815 = vpow2.f32 %v1187_v6 }
 0x6e2   : > { %v1193_v11 = vmul.f32 1.442695, %v1186_v9 }
 0x6e4   : > { %1817 = vpow2.f32 %v1193_v11 }
 0x6e5   : > { %1819 = vpow2.f32 %v1189_v10 }
 0x6ed   : > { %v1814_v12 = vpop.eup %1813 }
 0x6ee   : > { %v1201_v13 = vsel %vm445_vm6, %v1814_v12, 0.0  ;;  %v1816_v14 = vpop.eup %1815 }
 0x6ef   : > { %1202 = vadd.xlane.f32.xlu1 %v1201_v13  ;;  %v1195_v19 = vsel %vm445_vm6, %v1816_v14, 0.0 }
 0x6f1   : > { %v1818_v15 = vpop.eup %1817 }
 0x6f2   : > { %v1204_v16 = vsel %vm445_vm6, %v1818_v15, 0.0  ;;  %v1820_v17 = vpop.eup %1819 }
 0x6f3   : > { %1205 = vadd.xlane.f32.xlu0 %v1204_v16  ;;  %1196 = vadd.xlane.f32.xlu1 %v1195_v19  ;;  %v1198_v21 = vsel %vm445_vm6, %v1820_v17, 0.0 }
 0x6f7   : > { %1199 = vadd.xlane.f32.xlu0 %v1198_v21 }
 0x704   : > { %1219 = vrot.lane.b32.xlu1 %v2194_v33, %s1994_s11 }
 0x70d   : > { %1217 = vrot.lane.b32.xlu0 %v2174_v20, %s1994_s11 }
 0x778   : > { %v1203_v25 = vpop.xlane.xlu1 %1202 }
 0x77a   : > { %v1629_v26 = vpop.f32.mrf.mxu1 }
 0x77c   : > { %v1206_v27 = vpop.xlane.xlu0 %1205  ;;  %v1018_v28 = vpop.f32.mrf.mxu1 }
 0x77d   : > { %v1197_v29 = vpop.xlane.xlu1 %1196  ;;  %1821 = vrcp.f32 %v1206_v27 }
 0x77e   : > { %v1630_v30 = vpop.f32.mrf.mxu1  ;;  %1823 = vrcp.f32 %v1197_v29 }
 0x77f   : > { %1825 = vrcp.f32 %v1203_v25  ;;  %v1034_v36 = vpack.c.bf16 %v1630_v30, %v1629_v26 }
 0x780   : > { %v1200_v31 = vpop.xlane.xlu0 %1199  ;;  %v1021_v32 = vpop.f32.mrf.mxu1 }
 0x781   : > { %v1220_v34 = vpop.permute.xlu1 %1219  ;;  %1827 = vrcp.f32 %v1200_v31  ;;  %v1033_v35 = vpack.c.bf16 %v1021_v32, %v1018_v28 }
 0x782   : > { %1645 = vmatprep.subr.bf16.mxu1 %v1220_v34 }
 0x783   : > { %1633 = vmatprep.mubr.msk.bf16.mxu1 %vm383_vm1, %v1033_v35 }
 0x784   : > { %v1218_v20 = vpop.permute.xlu0 %1217  ;;  %1634 = vmatmul.mubr.msk.bf16.vlgmr.msra.gmra.mxu1 %vm383_vm1, %v1034_v36 }
 0x785   : > { %1646 = vmatpush3.bf16.msra.mxu1 %v1220_v34 }
 0x786   : > { %1647 = vmatprep.subr.bf16.mxu1 %v1218_v20 }
 0x789   : > { %1648 = vmatpush3.bf16.msra.mxu1 %v1218_v20 }
 0x78a   : > { %v1822_v33 = vpop.eup %1821  ;;  %1653 = vmatprep.subr.bf16.mxu1 %v1764_v46 }
 0x78b   : > { %v1824_v37 = vpop.eup %1823  ;;  %v1214_v40 = vmul.f32 %v1822_v33, %v1818_v15 }
 0x78c   : > { %v1826_v38 = vpop.eup %1825  ;;  %v1211_v41 = vmul.f32 %v1824_v37, %v1816_v14 }
 0x78d   : > { %v1213_v43 = vmul.f32 %v1826_v38, %v1814_v12 }
 0x78e   : > { %v1828_v39 = vpop.eup %1827 }
 0x78f   : > { %v1212_v42 = vmul.f32 %v1828_v39, %v1820_v17  ;;  %v1216_v45 = vpack.c.bf16 %v1214_v40, %v1213_v43 }
 0x791   : > { %v1215_v44 = vpack.c.bf16 %v1212_v42, %v1211_v41 }
 0x793   : > { %1649 = vmatprep.mubr.msk.bf16.mxu1 %vm445_vm6, %v1215_v44 }
 0x794   : > { %1650 = vmatmul.mubr.msk.bf16.vlgmr.msra.gmra.mxu1 %vm445_vm6, %v1216_v45 }
 0x795   : > { %1654 = vmatpush3.bf16.msra.mxu1 %v1764_v46 }
 0x844   : > { %v1635_v48 = vpop.f32.mrf.mxu1 }
 0x845   : > { %v1100_v49 = vadd.f32 %v1635_v48, %v2290_v57 }
 0x846   : > { %v1083_v47 = vpop.f32.mrf.mxu1 }
 0x847   : > { %v1098_v52 = vadd.f32 %v1083_v47, %v2292_v59  ;;  %v1519_v59 = vld [vmem:[%s2403_s3] ss:$0 sm:$0xff] }
 0x848   : > { %v1636_v55 = vpop.f32.mrf.mxu1 }
 0x849   : > { %v1101_v51 = vadd.f32 %v1636_v55, %v2294_v62 }
 0x84a   : > { %v1086_v53 = vpop.f32.mrf.mxu1 }
 0x84b   : > { %v1099_v54 = vadd.f32 %v1086_v53, %v846_v50 }
 0x854   : > { %v1651_v56 = vpop.f32.mrf.mxu1 }
 0x856   : > { %v1263_v58 = vpop.f32.mrf.mxu1 }
 0x858   : > { %v1652_v60 = vpop.f32.mrf.mxu1 }
 0x859   : > { %v1279_v1 = vpack.c.bf16 %v1652_v60, %v1651_v56 }
 0x85a   : > { %v1266_v61 = vpop.f32.mrf.mxu1 }
 0x85b   : > { %v1278_v0 = vpack.c.bf16 %v1266_v61, %v1263_v58 }
 0x85d   : > { %1655 = vmatprep.mubr.msk.bf16.mxu1 %vm383_vm1, %v1278_v0 }
 0x85e   : > { %1656 = vmatmul.mubr.msk.bf16.vlgmr.msra.gmra.mxu1 %vm383_vm1, %v1279_v1 }
 0x91e   : > { %v1657_v57 = vpop.f32.mrf.mxu1 }
 0x91f   : > { %v1345_v62 = vadd.f32 %v1657_v57, %v1100_v49 }
 0x920   : > { %v1328_v63 = vpop.f32.mrf.mxu1 }
 0x921   : > { %v1356_v24 = vadd.f32 %v1519_v59, %v1345_v62  ;;  %v1343_v18 = vadd.f32 %v1328_v63, %v1098_v52 }
 0x922   : > { %v1658_v2 = vpop.f32.mrf.mxu1 }
 0x923   : > { %1360 = vst.msk [vmem:[%s244_s26 + $0x10] sm:$0xff] %vm300_vm0, %v1356_v24  ;;  %v1354_v3 = vadd.f32 %v1519_v59, %v1343_v18  ;;  %v1346_v4 = vadd.f32 %v1658_v2, %v1101_v51 }
 0x924   : > { %v1331_v5 = vpop.f32.mrf.mxu1 }
 0x925   : > { %1358 = vst.msk [vmem:[%s244_s26] sm:$0xff] %vm300_vm0, %v1354_v3  ;;  %v1357_v6 = vadd.f32 %v1519_v59, %v1346_v4  ;;  %v1344_v7 = vadd.f32 %v1331_v5, %v1099_v54 }
 0x927   : > { %1361 = vst.msk [vmem:[%s244_s26 + $0x18] sm:$0xff] %vm300_vm0, %v1357_v6  ;;  %v1355_v8 = vadd.f32 %v1519_v59, %v1344_v7 }
 0x929   : > { %1359 = vst.msk [vmem:[%s244_s26 + $0x8] sm:$0xff] %vm300_vm0, %v1355_v8 }
 0x92a   : > { %1922 = shalt.err (!%p1919_p3)
}
 0x92b   : > { %s1923_s5 = scalar_lea.hbm %s2355_s27, 512  ;;  %s1927_s11 = scalar_lea.hbm %s2404_s4, 1024 }
 0x92c   : > { %p1924_p11 = scmp.ne.s32.totalorder %s2355_s27, %s1923_s5  ;;  %p1928_p4 = scmp.lt.s32.totalorder %s2355_s27, %s2404_s4 }
 0x92d   : > { %p1929_p6 = scmp.lt.s32.totalorder %s1927_s11, %s1923_s5 }
 0x92e   : > { %p1925_p9 = pnand %p1924_p11, %p2419_p2 }
 0x92f   : > { %p1930_p8 = por %p1929_p6, %p1928_p4 }
 0x930   : > { %p1926_p1 = pneg %p1925_p9 }
 0x932   : > { %p1931_p10 = pnand %p1930_p8, %p1926_p1 }
 0x934   : > { %1934 = shalt.err (!%p1931_p10)
}
 0x935   : > { %s1996_s26 = smov 128   ;;  %s1997_s8 = smov 8  }
 0x936   : > { %1677 = dma.vmem_to_hbm [thread:$0]  (%p2419_p2), %s2349_s6, 512, %s2355_s27, %s1363_s19, %s1996_s26, %s1996_s26, %s1997_s8  }
 0x937 PF: > { %s1391_s14 = sand.u32 1, %s1965_s15   ;;  %p2420_p7 = scmp.ne.s32.totalorder %s2410_s22, 0 }
 0x938   : > { %p2421_p12 = scmp.ge.s32.totalorder %s1977_s18, 2  ;;  %s1392_s20 = scalar_lea.sflag [#allocation4], %s1391_s14 }
 0x93a   : > { %p1691_p13 = pnand %p2421_p12, %p2420_p7 }
 0x93c   : > { %p1692_p0 = pneg %p1691_p13 }
 0x93e   : > { %1960 = dma.done.wait (%p1692_p0), %s1392_s20, 512  }
 0x93f   : > { %1962 = vsyncadd (%p1692_p0), %s1392_s20, 4294966784  ;;  %p18_p5 = scmp.ge.s32.totalorder %s2098_s13, 4   ;;  %s2422_s15 = smov %s1969_s16 }
 0x940   : > { %s2423_s16 = smov %s1973_s17  ;;  %s2424_s17 = smov %s2107_s24 }
 0x941   : > { %s2425_s18 = smov %s2098_s13  ;;  %20 = sbr.rel (!%p18_p5) target bundleno = 6 (0x6), region = 89 }
 0x946   :  { %1397 = vsyncpa [#allocation3], 1 }
 0x947   :  { %1399 = vsyncpa [#allocation3 + $0x1], 1 }
 0x948   :  { %1400 = vsyncpa [#allocation6], 1 }
 0x949   :  { %1401 = vsyncpa [#allocation4], 1 }
 0x94a   :  { %1403 = vsyncpa [#allocation4 + $0x1], 1 }

</bundles_post_ra>
